<compile_context>
chip_gen: v6e
topology: v6e:2x2x1
jax: 0.10.0
libtpu: 0.0.40
codegen_flags: <defaults>
</compile_context>

<pallas_src>
import jax
import jax.numpy as jnp
from jax.experimental import pallas as pl
from jax.experimental.pallas import tpu as pltpu

BATCH = 1
INPUT_SIZE = 6
HIDDEN_SIZE = 1          # decoupled from BATCH (they happen to both be 1)
OUT_FEATURES = 2
SEQ_LEN = 8

_LANES = 128             # f32 lane width; padded param/output slab width


def lstm_head_kernel(x_ref, p_ref, out_ref):
    """LSTM rollout over time + final Linear for H=1.

    x_ref  : (T, 6)    float32   input sequence (batch squeezed)
    p_ref  : (16, 128) float32   packed parameter slab:
               rows 0..5, cols 0..3 : W_ih^T           (6, 4)
               row  6,    cols 0..3 : W_hh^T           (1, 4)
               row  7,    cols 0..3 : b_ih + b_hh      (1, 4)
               row  8,    cols 0..1 : W_out^T (rest 0) (1, 128)
               row  9,    cols 0..1 : b_out   (rest 0) (1, 128)
    out_ref: (1, 128)  float32   lane-dense result row (cols 0..1 valid)
    """
    T = x_ref.shape[0]
    H = HIDDEN_SIZE
    G = 4 * H

    # Tile-aligned ref loads, then static value slices (cheap relayouts).
    blk0 = p_ref[0:8, :]                       # (8, 128)
    blk1 = p_ref[8:16, :]                      # (8, 128)
    w_ih_t   = blk0[0:INPUT_SIZE, 0:G]         # (6, 4)
    w_hh_row = blk0[INPUT_SIZE:INPUT_SIZE + 1, 0:G]      # (1, 4)
    b_row    = blk0[INPUT_SIZE + 1:INPUT_SIZE + 2, 0:G]  # (1, 4)
    w_out_row = blk1[0:1, :]                   # (1, 128) zero-padded
    b_out_row = blk1[1:2, :]                   # (1, 128) zero-padded

    # Hoisted input projection: all timesteps' input-gate pre-activations
    # (and the combined bias) in a single MXU op.
    xw = jnp.dot(x_ref[...], w_ih_t,
                 preferred_element_type=jnp.float32) + b_row   # (T, 4)

    h = jnp.zeros((1, 1), jnp.float32)
    c = jnp.zeros((1, 1), jnp.float32)

    # T is small and static -> unrolled python loop, static slices only.
    for t in range(T):
        # H=1 recurrence term is a VPU broadcast-mul, no MXU involved.
        gates = xw[t:t + 1, :] + h * w_hh_row                  # (1, 4)
        # Batched nonlinearities: one sigmoid + one tanh over the whole
        # gate vector, then pick lanes (PyTorch gate order: i, f, g, o).
        sig = jax.nn.sigmoid(gates)
        th = jnp.tanh(gates)
        i_g = sig[:, 0 * H:1 * H]
        f_g = sig[:, 1 * H:2 * H]
        g_g = th[:, 2 * H:3 * H]
        o_g = sig[:, 3 * H:4 * H]
        c = f_g * c + i_g * g_g
        h = o_g * jnp.tanh(c)

    # Final Linear (H=1): broadcast-mul against a lane-dense padded row.
    # Padded columns are zero in both weight and bias -> zeros beyond col 1.
    out_ref[...] = h * w_out_row + b_out_row


def rnn_forward(x, params):
    """x: (1, T, 6) float32 -> (1, 2) float32 (same as the PyTorch module)."""
    B, T, F = x.shape
    assert B == BATCH and F == INPUT_SIZE
    assert HIDDEN_SIZE == 1  # kernel specializes the H=1 recurrence to VPU mults

    H = HIDDEN_SIZE
    G = 4 * H

    # Pack every parameter into one (16, 128) f32 slab -> a single DMA.
    slab = jnp.zeros((16, _LANES), jnp.float32)
    slab = slab.at[0:INPUT_SIZE, 0:G].set(params["w_ih"].T)              # (6,4)
    slab = slab.at[INPUT_SIZE, 0:G].set(params["w_hh"].reshape(G))       # (4,)
    slab = slab.at[INPUT_SIZE + 1, 0:G].set(params["b_ih"] + params["b_hh"])
    slab = slab.at[8, 0:OUT_FEATURES].set(params["w_out"].reshape(OUT_FEATURES))
    slab = slab.at[9, 0:OUT_FEATURES].set(params["b_out"])

    x2d = x.reshape(T, F).astype(jnp.float32)

    vmem = pl.BlockSpec(memory_space=pltpu.MemorySpace.VMEM)
    out_padded = pl.pallas_call(
        lstm_head_kernel,
        out_shape=jax.ShapeDtypeStruct((1, _LANES), jnp.float32),
        in_specs=[vmem, vmem],
        out_specs=vmem,
    )(x2d, slab)
    return out_padded[:, :OUT_FEATURES]


def _reference_forward(x, params):
    """Pure-JAX reference replicating torch.nn.LSTM + Linear semantics."""
    H = HIDDEN_SIZE
    h = jnp.zeros((1, H), jnp.float32)
    c = jnp.zeros((1, H), jnp.float32)
    T = x.shape[1]
    for t in range(T):
        x_t = x[:, t, :]                                          # (1, 6)
        gates = (x_t @ params["w_ih"].T + h @ params["w_hh"].T
                 + params["b_ih"] + params["b_hh"])
        i_g = jax.nn.sigmoid(gates[:, 0 * H:1 * H])
        f_g = jax.nn.sigmoid(gates[:, 1 * H:2 * H])
        g_g = jnp.tanh(gates[:, 2 * H:3 * H])
        o_g = jax.nn.sigmoid(gates[:, 3 * H:4 * H])
        c = f_g * c + i_g * g_g
        h = o_g * jnp.tanh(c)
    return h @ params["w_out"].T + params["b_out"]


def init_params(key):
    """Deterministic init mimicking PyTorch's U(-1/sqrt(H), 1/sqrt(H))."""
    k = 1.0 / jnp.sqrt(jnp.float32(HIDDEN_SIZE))
    keys = jax.random.split(key, 6)
    u = lambda kk, shape, bound: jax.random.uniform(
        kk, shape, jnp.float32, -bound, bound)
    return {
        "w_ih": u(keys[0], (4 * HIDDEN_SIZE, INPUT_SIZE), k),
        "w_hh": u(keys[1], (4 * HIDDEN_SIZE, HIDDEN_SIZE), k),
        "b_ih": u(keys[2], (4 * HIDDEN_SIZE,), k),
        "b_hh": u(keys[3], (4 * HIDDEN_SIZE,), k),
        # nn.Linear(1, 2): bound = 1/sqrt(in_features) = 1
        "w_out": u(keys[4], (OUT_FEATURES, HIDDEN_SIZE), 1.0),
        "b_out": u(keys[5], (OUT_FEATURES,), 1.0),
    }


if __name__ == "__main__":
    key = jax.random.PRNGKey(0)
    pkey, xkey = jax.random.split(key)
    params = init_params(pkey)
    x = jax.random.normal(xkey, (BATCH, SEQ_LEN, INPUT_SIZE), jnp.float32)

    out = rnn_forward(x, params)
    out = jax.block_until_ready(out)

    ref = _reference_forward(x, params)
    assert out.shape == (BATCH, OUT_FEATURES)
    assert jnp.allclose(out, ref, atol=1e-5, rtol=1e-5), (out, ref)
    print("KERNEL_OK")
</pallas_src>

<mosaic_0001>
module attributes {stable_mosaic.version = 11 : i64} {
  func.func @lstm_head_kernel(%arg0: memref<8x6xf32, #tpu.memory_space<vmem>>, %arg1: memref<16x128xf32, #tpu.memory_space<vmem>>, %arg2: memref<1x128xf32, #tpu.memory_space<vmem>>) attributes {dimension_semantics = [], scalar_prefetch = 0 : i64, scratch_operands = 0 : i64, tpu.core_type = #tpu.core_type<tc>} {
    %c0 = arith.constant 0 : index
    %c0_0 = arith.constant 0 : index
    %0 = vector.load %arg1[%c0, %c0_0] : memref<16x128xf32, #tpu.memory_space<vmem>>, vector<8x128xf32>
    %c8 = arith.constant 8 : index
    %c0_1 = arith.constant 0 : index
    %1 = vector.load %arg1[%c8, %c0_1] : memref<16x128xf32, #tpu.memory_space<vmem>>, vector<8x128xf32>
    %2 = vector.extract_strided_slice %0 {offsets = [0, 0], sizes = [6, 4], strides = [1, 1]} : vector<8x128xf32> to vector<6x4xf32>
    %3 = vector.extract_strided_slice %0 {offsets = [6, 0], sizes = [1, 4], strides = [1, 1]} : vector<8x128xf32> to vector<1x4xf32>
    %4 = vector.extract_strided_slice %0 {offsets = [7, 0], sizes = [1, 4], strides = [1, 1]} : vector<8x128xf32> to vector<1x4xf32>
    %5 = vector.extract_strided_slice %1 {offsets = [0, 0], sizes = [1, 128], strides = [1, 1]} : vector<8x128xf32> to vector<1x128xf32>
    %6 = vector.extract_strided_slice %1 {offsets = [1, 0], sizes = [1, 128], strides = [1, 1]} : vector<8x128xf32> to vector<1x128xf32>
    %c0_2 = arith.constant 0 : index
    %c0_3 = arith.constant 0 : index
    %7 = vector.load %arg0[%c0_2, %c0_3] : memref<8x6xf32, #tpu.memory_space<vmem>>, vector<8x6xf32>
    %cst = arith.constant dense<0.000000e+00> : vector<8x4xf32>
    %8 = tpu.matmul %7, %2, %cst {dimension_numbers = #tpu.dot_dimension_numbers<[1], [0], [0], [1], [0, 0, 1, 1], [], []>} : vector<8x6xf32>, vector<6x4xf32>, vector<8x4xf32> -> vector<8x4xf32>
    %9 = vector.broadcast %4 : vector<1x4xf32> to vector<8x4xf32>
    %10 = arith.addf %8, %9 : vector<8x4xf32>
    %cst_4 = arith.constant 0.000000e+00 : f32
    %11 = vector.broadcast %cst_4 : f32 to vector<1x1xf32>
    %cst_5 = arith.constant 0.000000e+00 : f32
    %12 = vector.broadcast %cst_5 : f32 to vector<1x1xf32>
    %13 = vector.extract_strided_slice %10 {offsets = [0, 0], sizes = [1, 4], strides = [1, 1]} : vector<8x4xf32> to vector<1x4xf32>
    %14 = vector.broadcast %11 : vector<1x1xf32> to vector<1x4xf32>
    %15 = arith.mulf %14, %3 : vector<1x4xf32>
    %16 = arith.addf %13, %15 : vector<1x4xf32>
    %17 = arith.negf %16 : vector<1x4xf32>
    %18 = math.exp %17 : vector<1x4xf32>
    %cst_6 = arith.constant 1.000000e+00 : f32
    %19 = vector.broadcast %cst_6 : f32 to vector<1x4xf32>
    %20 = arith.addf %19, %18 : vector<1x4xf32>
    %21 = arith.divf %19, %20 : vector<1x4xf32>
    %22 = math.tanh %16 : vector<1x4xf32>
    %23 = vector.extract_strided_slice %21 {offsets = [0, 0], sizes = [1, 1], strides = [1, 1]} : vector<1x4xf32> to vector<1x1xf32>
    %24 = vector.extract_strided_slice %21 {offsets = [0, 1], sizes = [1, 1], strides = [1, 1]} : vector<1x4xf32> to vector<1x1xf32>
    %25 = vector.extract_strided_slice %22 {offsets = [0, 2], sizes = [1, 1], strides = [1, 1]} : vector<1x4xf32> to vector<1x1xf32>
    %26 = vector.extract_strided_slice %21 {offsets = [0, 3], sizes = [1, 1], strides = [1, 1]} : vector<1x4xf32> to vector<1x1xf32>
    %27 = arith.mulf %24, %12 : vector<1x1xf32>
    %28 = arith.mulf %23, %25 : vector<1x1xf32>
    %29 = arith.addf %27, %28 : vector<1x1xf32>
    %30 = math.tanh %29 : vector<1x1xf32>
    %31 = arith.mulf %26, %30 : vector<1x1xf32>
    %32 = vector.extract_strided_slice %10 {offsets = [1, 0], sizes = [1, 4], strides = [1, 1]} : vector<8x4xf32> to vector<1x4xf32>
    %33 = vector.broadcast %31 : vector<1x1xf32> to vector<1x4xf32>
    %34 = arith.mulf %33, %3 : vector<1x4xf32>
    %35 = arith.addf %32, %34 : vector<1x4xf32>
    %36 = arith.negf %35 : vector<1x4xf32>
    %37 = math.exp %36 : vector<1x4xf32>
    %cst_7 = arith.constant 1.000000e+00 : f32
    %38 = vector.broadcast %cst_7 : f32 to vector<1x4xf32>
    %39 = arith.addf %38, %37 : vector<1x4xf32>
    %40 = arith.divf %38, %39 : vector<1x4xf32>
    %41 = math.tanh %35 : vector<1x4xf32>
    %42 = vector.extract_strided_slice %40 {offsets = [0, 0], sizes = [1, 1], strides = [1, 1]} : vector<1x4xf32> to vector<1x1xf32>
    %43 = vector.extract_strided_slice %40 {offsets = [0, 1], sizes = [1, 1], strides = [1, 1]} : vector<1x4xf32> to vector<1x1xf32>
    %44 = vector.extract_strided_slice %41 {offsets = [0, 2], sizes = [1, 1], strides = [1, 1]} : vector<1x4xf32> to vector<1x1xf32>
    %45 = vector.extract_strided_slice %40 {offsets = [0, 3], sizes = [1, 1], strides = [1, 1]} : vector<1x4xf32> to vector<1x1xf32>
    %46 = arith.mulf %43, %29 : vector<1x1xf32>
    %47 = arith.mulf %42, %44 : vector<1x1xf32>
    %48 = arith.addf %46, %47 : vector<1x1xf32>
    %49 = math.tanh %48 : vector<1x1xf32>
    %50 = arith.mulf %45, %49 : vector<1x1xf32>
    %51 = vector.extract_strided_slice %10 {offsets = [2, 0], sizes = [1, 4], strides = [1, 1]} : vector<8x4xf32> to vector<1x4xf32>
    %52 = vector.broadcast %50 : vector<1x1xf32> to vector<1x4xf32>
    %53 = arith.mulf %52, %3 : vector<1x4xf32>
    %54 = arith.addf %51, %53 : vector<1x4xf32>
    %55 = arith.negf %54 : vector<1x4xf32>
    %56 = math.exp %55 : vector<1x4xf32>
    %cst_8 = arith.constant 1.000000e+00 : f32
    %57 = vector.broadcast %cst_8 : f32 to vector<1x4xf32>
    %58 = arith.addf %57, %56 : vector<1x4xf32>
    %59 = arith.divf %57, %58 : vector<1x4xf32>
    %60 = math.tanh %54 : vector<1x4xf32>
    %61 = vector.extract_strided_slice %59 {offsets = [0, 0], sizes = [1, 1], strides = [1, 1]} : vector<1x4xf32> to vector<1x1xf32>
    %62 = vector.extract_strided_slice %59 {offsets = [0, 1], sizes = [1, 1], strides = [1, 1]} : vector<1x4xf32> to vector<1x1xf32>
    %63 = vector.extract_strided_slice %60 {offsets = [0, 2], sizes = [1, 1], strides = [1, 1]} : vector<1x4xf32> to vector<1x1xf32>
    %64 = vector.extract_strided_slice %59 {offsets = [0, 3], sizes = [1, 1], strides = [1, 1]} : vector<1x4xf32> to vector<1x1xf32>
    %65 = arith.mulf %62, %48 : vector<1x1xf32>
    %66 = arith.mulf %61, %63 : vector<1x1xf32>
    %67 = arith.addf %65, %66 : vector<1x1xf32>
    %68 = math.tanh %67 : vector<1x1xf32>
    %69 = arith.mulf %64, %68 : vector<1x1xf32>
    %70 = vector.extract_strided_slice %10 {offsets = [3, 0], sizes = [1, 4], strides = [1, 1]} : vector<8x4xf32> to vector<1x4xf32>
    %71 = vector.broadcast %69 : vector<1x1xf32> to vector<1x4xf32>
    %72 = arith.mulf %71, %3 : vector<1x4xf32>
    %73 = arith.addf %70, %72 : vector<1x4xf32>
    %74 = arith.negf %73 : vector<1x4xf32>
    %75 = math.exp %74 : vector<1x4xf32>
    %cst_9 = arith.constant 1.000000e+00 : f32
    %76 = vector.broadcast %cst_9 : f32 to vector<1x4xf32>
    %77 = arith.addf %76, %75 : vector<1x4xf32>
    %78 = arith.divf %76, %77 : vector<1x4xf32>
    %79 = math.tanh %73 : vector<1x4xf32>
    %80 = vector.extract_strided_slice %78 {offsets = [0, 0], sizes = [1, 1], strides = [1, 1]} : vector<1x4xf32> to vector<1x1xf32>
    %81 = vector.extract_strided_slice %78 {offsets = [0, 1], sizes = [1, 1], strides = [1, 1]} : vector<1x4xf32> to vector<1x1xf32>
    %82 = vector.extract_strided_slice %79 {offsets = [0, 2], sizes = [1, 1], strides = [1, 1]} : vector<1x4xf32> to vector<1x1xf32>
    %83 = vector.extract_strided_slice %78 {offsets = [0, 3], sizes = [1, 1], strides = [1, 1]} : vector<1x4xf32> to vector<1x1xf32>
    %84 = arith.mulf %81, %67 : vector<1x1xf32>
    %85 = arith.mulf %80, %82 : vector<1x1xf32>
    %86 = arith.addf %84, %85 : vector<1x1xf32>
    %87 = math.tanh %86 : vector<1x1xf32>
    %88 = arith.mulf %83, %87 : vector<1x1xf32>
    %89 = vector.extract_strided_slice %10 {offsets = [4, 0], sizes = [1, 4], strides = [1, 1]} : vector<8x4xf32> to vector<1x4xf32>
    %90 = vector.broadcast %88 : vector<1x1xf32> to vector<1x4xf32>
    %91 = arith.mulf %90, %3 : vector<1x4xf32>
    %92 = arith.addf %89, %91 : vector<1x4xf32>
    %93 = arith.negf %92 : vector<1x4xf32>
    %94 = math.exp %93 : vector<1x4xf32>
    %cst_10 = arith.constant 1.000000e+00 : f32
    %95 = vector.broadcast %cst_10 : f32 to vector<1x4xf32>
    %96 = arith.addf %95, %94 : vector<1x4xf32>
    %97 = arith.divf %95, %96 : vector<1x4xf32>
    %98 = math.tanh %92 : vector<1x4xf32>
    %99 = vector.extract_strided_slice %97 {offsets = [0, 0], sizes = [1, 1], strides = [1, 1]} : vector<1x4xf32> to vector<1x1xf32>
    %100 = vector.extract_strided_slice %97 {offsets = [0, 1], sizes = [1, 1], strides = [1, 1]} : vector<1x4xf32> to vector<1x1xf32>
    %101 = vector.extract_strided_slice %98 {offsets = [0, 2], sizes = [1, 1], strides = [1, 1]} : vector<1x4xf32> to vector<1x1xf32>
    %102 = vector.extract_strided_slice %97 {offsets = [0, 3], sizes = [1, 1], strides = [1, 1]} : vector<1x4xf32> to vector<1x1xf32>
    %103 = arith.mulf %100, %86 : vector<1x1xf32>
    %104 = arith.mulf %99, %101 : vector<1x1xf32>
    %105 = arith.addf %103, %104 : vector<1x1xf32>
    %106 = math.tanh %105 : vector<1x1xf32>
    %107 = arith.mulf %102, %106 : vector<1x1xf32>
    %108 = vector.extract_strided_slice %10 {offsets = [5, 0], sizes = [1, 4], strides = [1, 1]} : vector<8x4xf32> to vector<1x4xf32>
    %109 = vector.broadcast %107 : vector<1x1xf32> to vector<1x4xf32>
    %110 = arith.mulf %109, %3 : vector<1x4xf32>
    %111 = arith.addf %108, %110 : vector<1x4xf32>
    %112 = arith.negf %111 : vector<1x4xf32>
    %113 = math.exp %112 : vector<1x4xf32>
    %cst_11 = arith.constant 1.000000e+00 : f32
    %114 = vector.broadcast %cst_11 : f32 to vector<1x4xf32>
    %115 = arith.addf %114, %113 : vector<1x4xf32>
    %116 = arith.divf %114, %115 : vector<1x4xf32>
    %117 = math.tanh %111 : vector<1x4xf32>
    %118 = vector.extract_strided_slice %116 {offsets = [0, 0], sizes = [1, 1], strides = [1, 1]} : vector<1x4xf32> to vector<1x1xf32>
    %119 = vector.extract_strided_slice %116 {offsets = [0, 1], sizes = [1, 1], strides = [1, 1]} : vector<1x4xf32> to vector<1x1xf32>
    %120 = vector.extract_strided_slice %117 {offsets = [0, 2], sizes = [1, 1], strides = [1, 1]} : vector<1x4xf32> to vector<1x1xf32>
    %121 = vector.extract_strided_slice %116 {offsets = [0, 3], sizes = [1, 1], strides = [1, 1]} : vector<1x4xf32> to vector<1x1xf32>
    %122 = arith.mulf %119, %105 : vector<1x1xf32>
    %123 = arith.mulf %118, %120 : vector<1x1xf32>
    %124 = arith.addf %122, %123 : vector<1x1xf32>
    %125 = math.tanh %124 : vector<1x1xf32>
    %126 = arith.mulf %121, %125 : vector<1x1xf32>
    %127 = vector.extract_strided_slice %10 {offsets = [6, 0], sizes = [1, 4], strides = [1, 1]} : vector<8x4xf32> to vector<1x4xf32>
    %128 = vector.broadcast %126 : vector<1x1xf32> to vector<1x4xf32>
    %129 = arith.mulf %128, %3 : vector<1x4xf32>
    %130 = arith.addf %127, %129 : vector<1x4xf32>
    %131 = arith.negf %130 : vector<1x4xf32>
    %132 = math.exp %131 : vector<1x4xf32>
    %cst_12 = arith.constant 1.000000e+00 : f32
    %133 = vector.broadcast %cst_12 : f32 to vector<1x4xf32>
    %134 = arith.addf %133, %132 : vector<1x4xf32>
    %135 = arith.divf %133, %134 : vector<1x4xf32>
    %136 = math.tanh %130 : vector<1x4xf32>
    %137 = vector.extract_strided_slice %135 {offsets = [0, 0], sizes = [1, 1], strides = [1, 1]} : vector<1x4xf32> to vector<1x1xf32>
    %138 = vector.extract_strided_slice %135 {offsets = [0, 1], sizes = [1, 1], strides = [1, 1]} : vector<1x4xf32> to vector<1x1xf32>
    %139 = vector.extract_strided_slice %136 {offsets = [0, 2], sizes = [1, 1], strides = [1, 1]} : vector<1x4xf32> to vector<1x1xf32>
    %140 = vector.extract_strided_slice %135 {offsets = [0, 3], sizes = [1, 1], strides = [1, 1]} : vector<1x4xf32> to vector<1x1xf32>
    %141 = arith.mulf %138, %124 : vector<1x1xf32>
    %142 = arith.mulf %137, %139 : vector<1x1xf32>
    %143 = arith.addf %141, %142 : vector<1x1xf32>
    %144 = math.tanh %143 : vector<1x1xf32>
    %145 = arith.mulf %140, %144 : vector<1x1xf32>
    %146 = vector.extract_strided_slice %10 {offsets = [7, 0], sizes = [1, 4], strides = [1, 1]} : vector<8x4xf32> to vector<1x4xf32>
    %147 = vector.broadcast %145 : vector<1x1xf32> to vector<1x4xf32>
    %148 = arith.mulf %147, %3 : vector<1x4xf32>
    %149 = arith.addf %146, %148 : vector<1x4xf32>
    %150 = arith.negf %149 : vector<1x4xf32>
    %151 = math.exp %150 : vector<1x4xf32>
    %cst_13 = arith.constant 1.000000e+00 : f32
    %152 = vector.broadcast %cst_13 : f32 to vector<1x4xf32>
    %153 = arith.addf %152, %151 : vector<1x4xf32>
    %154 = arith.divf %152, %153 : vector<1x4xf32>
    %155 = math.tanh %149 : vector<1x4xf32>
    %156 = vector.extract_strided_slice %154 {offsets = [0, 0], sizes = [1, 1], strides = [1, 1]} : vector<1x4xf32> to vector<1x1xf32>
    %157 = vector.extract_strided_slice %154 {offsets = [0, 1], sizes = [1, 1], strides = [1, 1]} : vector<1x4xf32> to vector<1x1xf32>
    %158 = vector.extract_strided_slice %155 {offsets = [0, 2], sizes = [1, 1], strides = [1, 1]} : vector<1x4xf32> to vector<1x1xf32>
    %159 = vector.extract_strided_slice %154 {offsets = [0, 3], sizes = [1, 1], strides = [1, 1]} : vector<1x4xf32> to vector<1x1xf32>
    %160 = arith.mulf %157, %143 : vector<1x1xf32>
    %161 = arith.mulf %156, %158 : vector<1x1xf32>
    %162 = arith.addf %160, %161 : vector<1x1xf32>
    %163 = math.tanh %162 : vector<1x1xf32>
    %164 = arith.mulf %159, %163 : vector<1x1xf32>
    %165 = vector.broadcast %164 : vector<1x1xf32> to vector<1x128xf32>
    %166 = arith.mulf %165, %5 : vector<1x128xf32>
    %167 = arith.addf %166, %6 : vector<1x128xf32>
    %c0_14 = arith.constant 0 : index
    %c0_15 = arith.constant 0 : index
    %168 = vector.load %arg2[%c0_14, %c0_15] : memref<1x128xf32, #tpu.memory_space<vmem>>, vector<1x128xf32>
    tpu.vector_store %arg2[%c0_14, %c0_15], %167 {strides = array<i32>} : memref<1x128xf32, #tpu.memory_space<vmem>>, vector<1x128xf32>,
    return
  }
}

</mosaic_0001>

<bundles_post_ra>
// kernel: tpu_custom_call.1
= control target key start
LH: loop header
LB: loop body
LE: loop exit
PB: predicated region body
PF: predicated region fallthrough
CT: control target
= control target key end

     0   :  { %7 = vsyncpa [#allocation3], 0  ;;  %s693_s0 = inlined_call_operand.hbm [shape: f32[8,6], index: 0, kind: input, shape index: {}]   ;;  %s694_s1 = inlined_call_operand.hbm [shape: f32[16,128], index: 1, kind: input, shape index: {}]   ;;  %s695_s2 = inlined_call_operand.hbm [shape: f32[1,128], index: 2, kind: output, shape index: {}]  }
   0x1   :  { %8 = vsyncpa [#allocation6], 0 }
   0x2   :  { %9 = vsyncpa [#allocation4], 0  ;;  %s612_s9 = smov [#allocation2]   ;;  %s613_s11 = smov [#allocation5]  }
   0x3   :  { %s16_s10 = sshll.u32 %s612_s9, 4  ;;  %s25_s12 = sshll.u32 %s613_s11, 4  ;;  %s17_s10 = int_to_ptr.vmem [resolvable:$true] %s16_s10  ;;  %s26_s12 = int_to_ptr.vmem [resolvable:$true] %s25_s12 }
   0x4   :  { %s554_s13 = scalar_lea.vmem %s17_s10, 128  ;;  %p559_p1 = scmp.lt.s32.totalorder %s17_s10, %s17_s10 }
   0x5   :  { %p555_p0 = scmp.ne.s32.totalorder %s17_s10, %s554_s13  ;;  %p560_p2 = scmp.lt.s32.totalorder %s554_s13, %s554_s13 }
   0x7   :  { %p561_p3 = por %p560_p2, %p559_p1 }
   0x9   :  { %p562_p4 = pnand %p561_p3, %p555_p0 }
   0xb   :  { %565 = shalt.err (!%p562_p4)
}
   0xc   :  { %19 = dma.hbm_to_vmem [thread:$0]  %s693_s0, 128, %s17_s10, [#allocation3]  }
   0xd   :  { %s574_s16 = scalar_lea.vmem %s26_s12, 256  ;;  %p579_p6 = scmp.lt.s32.totalorder %s26_s12, %s26_s12 }
   0xe   :  { %p575_p5 = scmp.ne.s32.totalorder %s26_s12, %s574_s16  ;;  %p580_p7 = scmp.lt.s32.totalorder %s574_s16, %s574_s16 }
  0x10   :  { %p581_p8 = por %p580_p7, %p579_p6 }
  0x12   :  { %p582_p9 = pnand %p581_p8, %p575_p5 }
  0x14   :  { %585 = shalt.err (!%p582_p9)
}
  0x15   :  { %s614_s17 = smov 128   ;;  %s615_s18 = smov 8  }
  0x16   :  { %31 = dma.hbm_to_vmem [thread:$0]  %s694_s1, 256, %s26_s12, [#allocation6], %s614_s17, %s614_s17, %s615_s18  }
  0x17   :  { %606 = dma.done.wait [#allocation3], 128  }
  0x18   :  { %607 = vsyncadd [#allocation3], 4294967168 }
  0x19   :  { %608 = dma.done.wait [#allocation6], 256  }
  0x1a   :  { %609 = vsyncadd [#allocation6], 4294967040  ;;  %v616_v0 = vmov 0.0   ;;  %vm617_vm0 = vmmov 0   ;;  %vm49_vm1 = vcmask 1045504   ;;  %vm45_vm2 = vcmask 48128  }
  0x1b   :  { %464 = vmatprep.subr.mxu0 %v616_v0  ;;  %466 = vmatprep.mubr.msk.f32.mxu0 %vm617_vm0, %v616_v0  ;;  %v644_v1 = vld [vmem:[#allocation5] sm:$0xff]  ;;  %v40_v2 = vld [vmem:[#allocation2] sm:$0xff]  ;;  %v41_v3 = vlaneseq  ;;  %s618_s0 = smov 126   ;;  %s619_s1 = smov 1   ;;  %v620_v23 = vmov 3  }
  0x1c   :  { %465 = vmatpush3.msk.msra.mxu0 %vm49_vm1, %v644_v1  ;;  %v123_v6 = vmul.f32 0.0, %v644_v1  ;;  %480 = vset.pattern.permute.xlu1 %v620_v23  ;;  %s621_s21 = smov 2   ;;  %v157_v27 = vrot.slane %v644_v1, 6  ;;  %v196_v46 = vrot.slane %v644_v1, 5  ;;  %s622_s22 = smov [#allocation7]  }
  0x1d   :  { %467 = vmatmul.mubr.msk.f32.vlgmr.msra.gmra.mxu0 %vm45_vm2, %v40_v2  ;;  %v42_v4 = vshrl.u32 %v41_v3, 7  ;;  %481 = vset.pattern.permute.xlu0 %v620_v23  ;;  %v235_v2 = vrot.slane %v644_v1, 4  ;;  %s442_s23 = sshll.u32 %s622_s22, 4  ;;  %s443_s23 = int_to_ptr.vmem [resolvable:$true] %s442_s23 }
  0x1e   :  { %v125_v8 = vrot.slane %v123_v6, 6  ;;  %s586_s24 = scalar_lea.vmem %s443_s23, 16  ;;  %s590_s25 = scalar_lea.vmem %s443_s23, 32 }
  0x1f   :  { %v43_v5 = vsub.s32 7, %v42_v4  ;;  %p587_p10 = scmp.ne.s32.totalorder %s443_s23, %s586_s24  ;;  %p591_p11 = scmp.lt.s32.totalorder %s443_s23, %s443_s23 }
  0x20   :  { %p592_p12 = scmp.lt.s32.totalorder %s590_s25, %s586_s24 }
  0x21   :  { %v44_v7 = vrot.slane %v644_v1, %v43_v5 }
  0x22   :  { %p593_p13 = por %p592_p12, %p591_p11 }
  0x24   :  { %p594_p0 = pnand %p593_p13, %p587_p10 }
  0xdd   :  { %v119_v9 = vpop.f32.mrf.mxu0 }
  0xde   :  { %v649_v10 = vadd.f32 %v119_v9, %v44_v7 }
  0xdf   :  { %v468_v11 = vpop.f32.mrf.mxu0 }
  0xe0   :  { %v127_v12 = vadd.f32 %v125_v8, %v649_v10 }
  0xe2   :  { %482 = vtanh.f32 %v127_v12  ;;  %v454_v14 = vmul.f32 -1.442695, %v127_v12 }
  0xe4   :  { %484 = vpow2.f32 %v454_v14 }
  0xef   :  { %v483_v13 = vpop.eup %482 }
  0xf0   :  { %137 = vrot.lane.b32.xlu0 %v483_v13, %s618_s0 }
  0xf1   :  { %v485_v15 = vpop.eup %484 }
  0xf2   :  { %v131_v16 = vadd.f32 1.0, %v485_v15 }
  0xf4   :  { %486 = vrcp.f32 %v131_v16 }
 0x101   :  { %v487_v17 = vpop.eup %486 }
 0x102   :  { %v135_v20 = vmul.f32 0.0, %v487_v17 }
 0x162   :  { %v138_v18 = vpop.permute.xlu0 %137 }
 0x163   :  { %v140_v19 = vmul.f32 %v487_v17, %v138_v18 }
 0x165   :  { %142 = vrot.lane.b32.xlu0 %v140_v19, %s619_s1 }
 0x1d7   :  { %v143_v21 = vpop.permute.xlu0 %142 }
 0x1d8   :  { %v145_v22 = vadd.f32 %v143_v21, %v135_v20 }
 0x1da   :  { %488 = vtanh.f32 %v145_v22  ;;  %v172_v39 = vrot.slane %v145_v22, 7  ;;  %v274_v22 = vrot.slane %v644_v1, 3 }
 0x1e7   :  { %v489_v24 = vpop.eup %488 }
 0x1e8   :  { %148 = vrot.lane.b32.xlu1 %v489_v24, %s621_s21 }
 0x25a   :  { %v149_v25 = vpop.permute.xlu1 %148 }
 0x25b   :  { %v151_v26 = vmul.f32 %v487_v17, %v149_v25 }
 0x25d   :  { %154 = vperm.xlu1 %480, %v151_v26  }
 0x2d8   :  { %v155_v28 = vpop.permute.xlu1 %154 }
 0x2d9   :  { %v159_v29 = vmul.f32 %v157_v27, %v155_v28 }
 0x2db   :  { %v161_v30 = vrot.slane %v159_v29, 7 }
 0x2dd   :  { %v163_v31 = vadd.f32 %v161_v30, %v649_v10 }
 0x2df   :  { %490 = vtanh.f32 %v163_v31  ;;  %v455_v33 = vmul.f32 -1.442695, %v163_v31 }
 0x2e1   :  { %492 = vpow2.f32 %v455_v33 }
 0x2ec   :  { %v491_v32 = vpop.eup %490 }
 0x2ed   :  { %176 = vrot.lane.b32.xlu0 %v491_v32, %s618_s0 }
 0x2ee   :  { %v493_v34 = vpop.eup %492 }
 0x2ef   :  { %v167_v35 = vadd.f32 1.0, %v493_v34 }
 0x2f1   :  { %494 = vrcp.f32 %v167_v35 }
 0x2fe   :  { %v495_v36 = vpop.eup %494 }
 0x2ff   :  { %v174_v40 = vmul.f32 %v495_v36, %v172_v39 }
 0x35f   :  { %v177_v37 = vpop.permute.xlu0 %176 }
 0x360   :  { %v179_v38 = vmul.f32 %v495_v36, %v177_v37 }
 0x362   :  { %181 = vrot.lane.b32.xlu1 %v179_v38, %s619_s1 }
 0x3d4   :  { %v182_v41 = vpop.permute.xlu1 %181 }
 0x3d5   :  { %v184_v42 = vadd.f32 %v182_v41, %v174_v40  ;;  %v313_v41 = vrot.slane %v644_v1, 2 }
 0x3d7   :  { %496 = vtanh.f32 %v184_v42  ;;  %v211_v58 = vrot.slane %v184_v42, 7 }
 0x3e4   :  { %v497_v43 = vpop.eup %496 }
 0x3e5   :  { %187 = vrot.lane.b32.xlu0 %v497_v43, %s621_s21 }
 0x457   :  { %v188_v44 = vpop.permute.xlu0 %187 }
 0x458   :  { %v190_v45 = vmul.f32 %v495_v36, %v188_v44 }
 0x45a   :  { %193 = vperm.xlu1 %480, %v190_v45  }
 0x4d5   :  { %v194_v47 = vpop.permute.xlu1 %193 }
 0x4d6   :  { %v198_v48 = vmul.f32 %v196_v46, %v194_v47 }
 0x4d8   :  { %v200_v49 = vrot.slane %v198_v48, 7 }
 0x4da   :  { %v202_v50 = vadd.f32 %v200_v49, %v649_v10 }
 0x4dc   :  { %498 = vtanh.f32 %v202_v50  ;;  %v456_v52 = vmul.f32 -1.442695, %v202_v50 }
 0x4de   :  { %500 = vpow2.f32 %v456_v52 }
 0x4e9   :  { %v499_v51 = vpop.eup %498 }
 0x4ea   :  { %215 = vrot.lane.b32.xlu0 %v499_v51, %s618_s0 }
 0x4eb   :  { %v501_v53 = vpop.eup %500 }
 0x4ec   :  { %v206_v54 = vadd.f32 1.0, %v501_v53 }
 0x4ee   :  { %502 = vrcp.f32 %v206_v54 }
 0x4fb   :  { %v503_v55 = vpop.eup %502 }
 0x4fc   :  { %v213_v59 = vmul.f32 %v503_v55, %v211_v58 }
 0x55c   :  { %v216_v56 = vpop.permute.xlu0 %215 }
 0x55d   :  { %v218_v57 = vmul.f32 %v503_v55, %v216_v56 }
 0x55f   :  { %220 = vrot.lane.b32.xlu1 %v218_v57, %s619_s1 }
 0x5d1   :  { %v221_v60 = vpop.permute.xlu1 %220 }
 0x5d2   :  { %v223_v61 = vadd.f32 %v221_v60, %v213_v59  ;;  %v352_v60 = vrot.slane %v644_v1, 1 }
 0x5d4   :  { %504 = vtanh.f32 %v223_v61  ;;  %v250_v15 = vrot.slane %v223_v61, 7 }
 0x5e1   :  { %v505_v62 = vpop.eup %504 }
 0x5e2   :  { %226 = vrot.lane.b32.xlu0 %v505_v62, %s621_s21 }
 0x654   :  { %v227_v63 = vpop.permute.xlu0 %226 }
 0x655   :  { %v229_v0 = vmul.f32 %v503_v55, %v227_v63 }
 0x657   :  { %232 = vperm.xlu1 %480, %v229_v0  }
 0x6d2   :  { %v233_v3 = vpop.permute.xlu1 %232 }
 0x6d3   :  { %v237_v4 = vmul.f32 %v235_v2, %v233_v3 }
 0x6d5   :  { %v239_v5 = vrot.slane %v237_v4, 7 }
 0x6d7   :  { %v241_v6 = vadd.f32 %v239_v5, %v649_v10 }
 0x6d9   :  { %506 = vtanh.f32 %v241_v6  ;;  %v457_v8 = vmul.f32 -1.442695, %v241_v6 }
 0x6db   :  { %508 = vpow2.f32 %v457_v8 }
 0x6e6   :  { %v507_v7 = vpop.eup %506 }
 0x6e7   :  { %254 = vrot.lane.b32.xlu0 %v507_v7, %s618_s0 }
 0x6e8   :  { %v509_v9 = vpop.eup %508 }
 0x6e9   :  { %v245_v11 = vadd.f32 1.0, %v509_v9 }
 0x6eb   :  { %510 = vrcp.f32 %v245_v11 }
 0x6f8   :  { %v511_v12 = vpop.eup %510 }
 0x6f9   :  { %v252_v16 = vmul.f32 %v511_v12, %v250_v15 }
 0x759   :  { %v255_v13 = vpop.permute.xlu0 %254 }
 0x75a   :  { %v257_v14 = vmul.f32 %v511_v12, %v255_v13 }
 0x75c   :  { %259 = vrot.lane.b32.xlu1 %v257_v14, %s619_s1 }
 0x7ce   :  { %v260_v17 = vpop.permute.xlu1 %259 }
 0x7cf   :  { %v262_v18 = vadd.f32 %v260_v17, %v252_v16 }
 0x7d1   :  { %512 = vtanh.f32 %v262_v18  ;;  %v289_v34 = vrot.slane %v262_v18, 7 }
 0x7de   :  { %v513_v19 = vpop.eup %512 }
 0x7df   :  { %265 = vrot.lane.b32.xlu0 %v513_v19, %s621_s21 }
 0x851   :  { %v266_v20 = vpop.permute.xlu0 %265 }
 0x852   :  { %v268_v21 = vmul.f32 %v511_v12, %v266_v20 }
 0x854   :  { %271 = vperm.xlu1 %480, %v268_v21  }
 0x8cf   :  { %v272_v23 = vpop.permute.xlu1 %271 }
 0x8d0   :  { %v276_v24 = vmul.f32 %v274_v22, %v272_v23 }
 0x8d2   :  { %v278_v25 = vrot.slane %v276_v24, 7 }
 0x8d4   :  { %v280_v26 = vadd.f32 %v278_v25, %v649_v10 }
 0x8d6   :  { %514 = vtanh.f32 %v280_v26  ;;  %v458_v28 = vmul.f32 -1.442695, %v280_v26 }
 0x8d8   :  { %516 = vpow2.f32 %v458_v28 }
 0x8e3   :  { %v515_v27 = vpop.eup %514 }
 0x8e4   :  { %293 = vrot.lane.b32.xlu0 %v515_v27, %s618_s0 }
 0x8e5   :  { %v517_v29 = vpop.eup %516 }
 0x8e6   :  { %v284_v30 = vadd.f32 1.0, %v517_v29 }
 0x8e8   :  { %518 = vrcp.f32 %v284_v30 }
 0x8f5   :  { %v519_v31 = vpop.eup %518 }
 0x8f6   :  { %v291_v35 = vmul.f32 %v519_v31, %v289_v34 }
 0x956   :  { %v294_v32 = vpop.permute.xlu0 %293 }
 0x957   :  { %v296_v33 = vmul.f32 %v519_v31, %v294_v32 }
 0x959   :  { %298 = vrot.lane.b32.xlu1 %v296_v33, %s619_s1  ;;  %v39_v33 = vld [vmem:[#allocation5 + $0x8] sm:$0xff] }
 0x95a   :  { %v429_v34 = vrot.slane %v39_v33, 1 }
 0x9cb   :  { %v299_v36 = vpop.permute.xlu1 %298 }
 0x9cc   :  { %v301_v37 = vadd.f32 %v299_v36, %v291_v35  ;;  %v432_v35 = vrot.slane %v39_v33, 2 }
 0x9ce   :  { %520 = vtanh.f32 %v301_v37  ;;  %v328_v53 = vrot.slane %v301_v37, 7 }
 0x9db   :  { %v521_v38 = vpop.eup %520 }
 0x9dc   :  { %304 = vrot.lane.b32.xlu0 %v521_v38, %s621_s21 }
 0xa4e   :  { %v305_v39 = vpop.permute.xlu0 %304 }
 0xa4f   :  { %v307_v40 = vmul.f32 %v519_v31, %v305_v39 }
 0xa51   :  { %310 = vperm.xlu1 %480, %v307_v40  }
 0xacc   :  { %v311_v42 = vpop.permute.xlu1 %310 }
 0xacd   :  { %v315_v43 = vmul.f32 %v313_v41, %v311_v42 }
 0xacf   :  { %v317_v44 = vrot.slane %v315_v43, 7 }
 0xad1   :  { %v319_v45 = vadd.f32 %v317_v44, %v649_v10 }
 0xad3   :  { %522 = vtanh.f32 %v319_v45  ;;  %v459_v47 = vmul.f32 -1.442695, %v319_v45 }
 0xad5   :  { %524 = vpow2.f32 %v459_v47 }
 0xae0   :  { %v523_v46 = vpop.eup %522 }
 0xae1   :  { %332 = vrot.lane.b32.xlu0 %v523_v46, %s618_s0 }
 0xae2   :  { %v525_v48 = vpop.eup %524 }
 0xae3   :  { %v323_v49 = vadd.f32 1.0, %v525_v48 }
 0xae5   :  { %526 = vrcp.f32 %v323_v49 }
 0xaf2   :  { %v527_v50 = vpop.eup %526 }
 0xaf3   :  { %v330_v54 = vmul.f32 %v527_v50, %v328_v53 }
 0xb53   :  { %v333_v51 = vpop.permute.xlu0 %332 }
 0xb54   :  { %v335_v52 = vmul.f32 %v527_v50, %v333_v51 }
 0xb56   :  { %337 = vrot.lane.b32.xlu1 %v335_v52, %s619_s1 }
 0xbc8   :  { %v338_v55 = vpop.permute.xlu1 %337 }
 0xbc9   :  { %v340_v56 = vadd.f32 %v338_v55, %v330_v54 }
 0xbcb   :  { %528 = vtanh.f32 %v340_v56  ;;  %v367_v9 = vrot.slane %v340_v56, 7 }
 0xbd8   :  { %v529_v57 = vpop.eup %528 }
 0xbd9   :  { %343 = vrot.lane.b32.xlu0 %v529_v57, %s621_s21 }
 0xc4b   :  { %v344_v58 = vpop.permute.xlu0 %343 }
 0xc4c   :  { %v346_v59 = vmul.f32 %v527_v50, %v344_v58 }
 0xc4e   :  { %349 = vperm.xlu1 %480, %v346_v59  }
 0xcc9   :  { %v350_v61 = vpop.permute.xlu1 %349 }
 0xcca   :  { %v354_v62 = vmul.f32 %v352_v60, %v350_v61 }
 0xccc   :  { %v356_v63 = vrot.slane %v354_v62, 7 }
 0xcce   :  { %v358_v0 = vadd.f32 %v356_v63, %v649_v10 }
 0xcd0   :  { %530 = vtanh.f32 %v358_v0  ;;  %v460_v3 = vmul.f32 -1.442695, %v358_v0 }
 0xcd2   :  { %532 = vpow2.f32 %v460_v3 }
 0xcdd   :  { %v531_v2 = vpop.eup %530 }
 0xcde   :  { %371 = vrot.lane.b32.xlu0 %v531_v2, %s618_s0 }
 0xcdf   :  { %v533_v4 = vpop.eup %532 }
 0xce0   :  { %v362_v5 = vadd.f32 1.0, %v533_v4 }
 0xce2   :  { %534 = vrcp.f32 %v362_v5 }
 0xcef   :  { %v535_v6 = vpop.eup %534 }
 0xcf0   :  { %v369_v11 = vmul.f32 %v535_v6, %v367_v9 }
 0xd50   :  { %v372_v7 = vpop.permute.xlu0 %371 }
 0xd51   :  { %v374_v8 = vmul.f32 %v535_v6, %v372_v7 }
 0xd53   :  { %376 = vrot.lane.b32.xlu1 %v374_v8, %s619_s1 }
 0xdc5   :  { %v377_v12 = vpop.permute.xlu1 %376 }
 0xdc6   :  { %v379_v13 = vadd.f32 %v377_v12, %v369_v11 }
 0xdc8   :  { %536 = vtanh.f32 %v379_v13  ;;  %v404_v28 = vrot.slane %v379_v13, 7 }
 0xdd5   :  { %v537_v14 = vpop.eup %536 }
 0xdd6   :  { %382 = vrot.lane.b32.xlu0 %v537_v14, %s621_s21 }
 0xe48   :  { %v383_v15 = vpop.permute.xlu0 %382 }
 0xe49   :  { %v385_v16 = vmul.f32 %v535_v6, %v383_v15 }
 0xe4b   :  { %388 = vperm.xlu1 %480, %v385_v16  }
 0xec6   :  { %v389_v17 = vpop.permute.xlu1 %388 }
 0xec7   :  { %v391_v18 = vmul.f32 %v389_v17, %v644_v1 }
 0xec9   :  { %v393_v19 = vrot.slane %v391_v18, 7 }
 0xecb   :  { %v395_v20 = vadd.f32 %v393_v19, %v649_v10 }
 0xecd   :  { %538 = vtanh.f32 %v395_v20  ;;  %v461_v22 = vmul.f32 -1.442695, %v395_v20 }
 0xecf   :  { %540 = vpow2.f32 %v461_v22 }
 0xeda   :  { %v539_v21 = vpop.eup %538 }
 0xedb   :  { %408 = vrot.lane.b32.xlu0 %v539_v21, %s618_s0 }
 0xedc   :  { %v541_v23 = vpop.eup %540 }
 0xedd   :  { %v399_v24 = vadd.f32 1.0, %v541_v23 }
 0xedf   :  { %542 = vrcp.f32 %v399_v24 }
 0xeec   :  { %v543_v25 = vpop.eup %542 }
 0xeed   :  { %v406_v29 = vmul.f32 %v543_v25, %v404_v28 }
 0xf4d   :  { %v409_v26 = vpop.permute.xlu0 %408 }
 0xf4e   :  { %v411_v27 = vmul.f32 %v543_v25, %v409_v26 }
 0xf50   :  { %413 = vrot.lane.b32.xlu1 %v411_v27, %s619_s1 }
 0xfc2   :  { %v414_v1 = vpop.permute.xlu1 %413 }
 0xfc3   :  { %v416_v30 = vadd.f32 %v414_v1, %v406_v29 }
 0xfc5   :  { %544 = vtanh.f32 %v416_v30 }
 0xfd2   :  { %v545_v10 = vpop.eup %544 }
 0xfd3   :  { %419 = vrot.lane.b32.xlu0 %v545_v10, %s621_s21 }
0x1045   :  { %v420_v31 = vpop.permute.xlu0 %419 }
0x1046   :  { %v422_v32 = vmul.f32 %v543_v25, %v420_v31 }
0x1048   :  { %425 = vperm.xlu1 %480, %v422_v32  }
0x10c3   :  { %v426_v36 = vpop.permute.xlu1 %425 }
0x10c4   :  { %v431_v37 = vmul.f32 %v429_v34, %v426_v36 }
0x10c6   :  { %v434_v38 = vadd.f32 %v432_v35, %v431_v37 }
0x10c8   :  { %435 = vst [vmem:[#allocation7 - $0x7] sm:$0x80] %v434_v38 }
0x10c9   :  { %597 = shalt.err (!%p594_p0)
}
0x10ca   :  { %445 = dma.vmem_to_hbm [thread:$0]  %s443_s23, 16, %s695_s2, [#allocation4]  }
0x10cb   :  { %610 = dma.done.wait [#allocation4], 16  }
0x10cc   :  { %611 = vsyncadd [#allocation4], 4294967280 }
0x10cd   :  { %449 = vsyncpa [#allocation3], 1 }
0x10ce   :  { %450 = vsyncpa [#allocation6], 1 }
0x10cf   :  { %451 = vsyncpa [#allocation4], 1 }

</bundles_post_ra>
